<compile_context>
chip_gen: v6e
topology: v6e:2x2x1
jax: 0.10.0
libtpu: 0.0.40
codegen_flags: <defaults>
</compile_context>

<pallas_src>
import jax
import jax.numpy as jnp
from jax.experimental import pallas as pl
from jax.experimental.pallas import tpu as pltpu


# ----------------------------------------------------------------------------
# Pallas kernel: one grid step == TT RNN timesteps (sequential recurrence).
# The hidden state is carried across grid iterations in a VMEM scratch buffer.
# ----------------------------------------------------------------------------
def _make_rnn_kernel(tt):
    def _rnn_kernel(pre_ref,    # (TT, B, H)  precomputed x@W_in^T + b_in + b_rec
                    wrec_ref,   # (H, H)      W_rec^T (already transposed)
                    hid_ref,    # (TT, B, H)  hiddens for this time block
                    h_scr):     # (B, H) f32  carried hidden state (VMEM scratch)
        # h_0 = zeros
        @pl.when(pl.program_id(0) == 0)
        def _():
            h_scr[...] = jnp.zeros_like(h_scr)

        wrec = wrec_ref[...]    # hoist the weight load out of the inner loop

        def body(i, h):
            # h' = relu(h @ W_rec^T + (x_t @ W_in^T + b_in + b_rec))
            pre = (jnp.dot(h, wrec, preferred_element_type=jnp.float32)
                   + pre_ref[i])
            h_new = jnp.maximum(pre, 0.0)          # activation_type == 'relu'
            hid_ref[i] = h_new.astype(hid_ref.dtype)
            return h_new

        # tt is a static Python int -> fully unrolled, LLO-visible inner loop.
        h_final = jax.lax.fori_loop(0, tt, body, h_scr[...], unroll=True)
        h_scr[...] = h_final

    return _rnn_kernel


def rnn_forward(inputs, params, *, time_block=8):
    """inputs: (B, T, D_in) float32.  Returns (outputs [B,T,O], hiddens [B,T,H])."""
    B, T, D_in = inputs.shape
    H = params["w_rec"].shape[0]
    O = params["w_out"].shape[0]
    f32 = jnp.float32

    x = inputs.astype(f32)

    # ---- hoisted input projection: one big (B*T, D_in)x(D_in, H) matmul ------
    pre_in = x @ params["w_in"].T + (params["b_in"] + params["b_rec"])   # (B,T,H)

    # ---- pad batch to sublane multiple of 8; pad T to a multiple of TT -------
    B_pad = max(8, ((B + 7) // 8) * 8)
    TT = max(1, min(time_block, T))
    T_pad = ((T + TT - 1) // TT) * TT

    pre_tm = jnp.transpose(pre_in, (1, 0, 2))                 # (T, B, H)
    pre_tm = jnp.pad(pre_tm, ((0, T_pad - T), (0, B_pad - B), (0, 0)))

    wrec_t = params["w_rec"].T.astype(f32)                    # (H, H)

    # VMEM budget: 2x-buffered in/out time blocks + weights + carry, with slack.
    block_bytes = TT * B_pad * H * 4
    vmem_needed = 2 * (H * H * 4) + 4 * block_bytes + B_pad * H * 4
    vmem_limit = int(min(max(4 * vmem_needed, 8 * 1024 * 1024), 48 * 1024 * 1024))

    hid_tm = pl.pallas_call(
        _make_rnn_kernel(TT),
        out_shape=jax.ShapeDtypeStruct((T_pad, B_pad, H), f32),
        grid_spec=pltpu.PrefetchScalarGridSpec(
            num_scalar_prefetch=0,
            grid=(T_pad // TT,),
            in_specs=[
                pl.BlockSpec((TT, B_pad, H), lambda t: (t, 0, 0)),  # pre_in block
                pl.BlockSpec((H, H), lambda t: (0, 0)),             # W_rec^T (invariant)
            ],
            out_specs=pl.BlockSpec((TT, B_pad, H), lambda t: (t, 0, 0)),
            scratch_shapes=[pltpu.VMEM((B_pad, H), f32)],
        ),
        compiler_params=pltpu.CompilerParams(
            dimension_semantics=("arbitrary",),     # recurrence -> sequential grid
            vmem_limit_bytes=vmem_limit,
        ),
    )(pre_tm, wrec_t)

    hiddens = jnp.transpose(hid_tm[:T, :B], (1, 0, 2))        # (B, T, H)

    # ---- hoisted output projection: one big (B*T, H)x(H, O) matmul -----------
    outputs = (params["scale"] * (hiddens @ params["w_out"].T + params["b_out"])
               - params["shift"])                              # (B, T, O)
    return outputs, hiddens


# ----------------------------------------------------------------------------
# Deterministic parameter init (mirrors __init__ with orthog=True:
# orthogonal weight matrices, zero biases, scale=1, shift=0).
# ----------------------------------------------------------------------------
def _orthogonal(key, out_dim, in_dim):
    a = jax.random.normal(key, (max(out_dim, in_dim), min(out_dim, in_dim)),
                          dtype=jnp.float32)
    q, r = jnp.linalg.qr(a)
    q = q * jnp.sign(jnp.diagonal(r))          # make decomposition unique
    if out_dim < in_dim:
        q = q.T
    return q[:out_dim, :in_dim]


def init_params(key, hidden_size, input_size, output_size):
    k1, k2, k3 = jax.random.split(key, 3)
    return {
        "w_rec": _orthogonal(k1, hidden_size, hidden_size),
        "b_rec": jnp.zeros((hidden_size,), jnp.float32),
        "w_in": _orthogonal(k2, hidden_size, input_size),
        "b_in": jnp.zeros((hidden_size,), jnp.float32),
        "w_out": _orthogonal(k3, output_size, hidden_size),
        "b_out": jnp.zeros((output_size,), jnp.float32),
        "scale": jnp.ones((output_size,), jnp.float32),
        "shift": jnp.zeros((output_size,), jnp.float32),
    }


# Pure-JAX reference (same math, lax.scan) for a sanity check.
def rnn_forward_ref(inputs, params):
    B, T, _ = inputs.shape
    H = params["w_rec"].shape[0]

    def step(h, x_t):
        h_new = jax.nn.relu(h @ params["w_rec"].T + params["b_rec"]
                            + x_t @ params["w_in"].T + params["b_in"])
        y = params["scale"] * (h_new @ params["w_out"].T + params["b_out"]) - params["shift"]
        return h_new, (y, h_new)

    h0 = jnp.zeros((B, H), jnp.float32)
    _, (ys, hs) = jax.lax.scan(step, h0, jnp.transpose(inputs, (1, 0, 2)))
    return jnp.transpose(ys, (1, 0, 2)), jnp.transpose(hs, (1, 0, 2))


if __name__ == "__main__":
    B, T = 2, 8
    hidden_size, input_size, output_size = 32, 16, 8

    key = jax.random.PRNGKey(0)
    k_param, k_x = jax.random.split(key)
    params = init_params(k_param, hidden_size, input_size, output_size)
    x = jax.random.normal(k_x, (B, T, input_size), dtype=jnp.float32)

    outputs, hiddens = rnn_forward(x, params)
    outputs = jax.block_until_ready(outputs)
    hiddens = jax.block_until_ready(hiddens)

    # sanity check against pure-JAX reference
    ref_out, ref_hid = rnn_forward_ref(x, params)
    assert outputs.shape == (B, T, output_size)
    assert hiddens.shape == (B, T, hidden_size)
    assert jnp.allclose(outputs, ref_out, atol=1e-4, rtol=1e-5)
    assert jnp.allclose(hiddens, ref_hid, atol=1e-4, rtol=1e-5)

    print("KERNEL_OK")
</pallas_src>

<mosaic_0001>
module attributes {stable_mosaic.version = 11 : i64} {
  func.func @_rnn_kernel(%arg0: i32, %arg1: memref<8x8x32xf32, #tpu.memory_space<vmem>>, %arg2: memref<32x32xf32, #tpu.memory_space<vmem>>, %arg3: memref<8x8x32xf32, #tpu.memory_space<vmem>>, %arg4: memref<8x32xf32, #tpu.memory_space<vmem>>) attributes {dimension_semantics = [#tpu.dimension_semantics<arbitrary>], iteration_bounds = array<i64: 1>, scalar_prefetch = 0 : i64, scratch_operands = 1 : i64, tpu.core_type = #tpu.core_type<tc>, window_params = [{transform_indices = @transform_0, window_bounds = array<i64: 8, 8, 32>}, {pipeline_mode = #tpu.pipeline_mode<synchronous>, transform_indices = @transform_1, window_bounds = array<i64: 32, 32>}, {transform_indices = @transform_2, window_bounds = array<i64: 8, 8, 32>}]} {
    %c0_i32 = arith.constant 0 : i32
    %0 = arith.cmpi eq, %arg0, %c0_i32 : i32
    %1 = arith.extui %0 : i1 to i32
    %c0_i32_0 = arith.constant 0 : i32
    %2 = arith.cmpi ne, %1, %c0_i32_0 : i32
    scf.if %2 {
      %cst_54 = arith.constant 0.000000e+00 : f32
      %94 = vector.broadcast %cst_54 : f32 to vector<8x32xf32>
      %c0_55 = arith.constant 0 : index
      %c0_56 = arith.constant 0 : index
      %95 = vector.load %arg4[%c0_55, %c0_56] : memref<8x32xf32, #tpu.memory_space<vmem>>, vector<8x32xf32>
      tpu.vector_store %arg4[%c0_55, %c0_56], %94 {strides = array<i32>} : memref<8x32xf32, #tpu.memory_space<vmem>>, vector<8x32xf32>,
    } else {
    }
    %c0 = arith.constant 0 : index
    %c0_1 = arith.constant 0 : index
    %3 = vector.load %arg2[%c0, %c0_1] : memref<32x32xf32, #tpu.memory_space<vmem>>, vector<32x32xf32>
    %c0_2 = arith.constant 0 : index
    %c0_3 = arith.constant 0 : index
    %4 = vector.load %arg4[%c0_2, %c0_3] : memref<8x32xf32, #tpu.memory_space<vmem>>, vector<8x32xf32>
    %c0_i32_4 = arith.constant 0 : i32
    %cst = arith.constant dense<0.000000e+00> : vector<8x32xf32>
    %5 = tpu.matmul %4, %3, %cst {dimension_numbers = #tpu.dot_dimension_numbers<[1], [0], [0], [1], [0, 0, 1, 1], [], []>} : vector<8x32xf32>, vector<32x32xf32>, vector<8x32xf32> -> vector<8x32xf32>
    %6 = arith.index_cast %c0_i32_4 : i32 to index
    %c0_5 = arith.constant 0 : index
    %c0_6 = arith.constant 0 : index
    %7 = vector.load %arg1[%6, %c0_5, %c0_6] : memref<8x8x32xf32, #tpu.memory_space<vmem>>, vector<1x8x32xf32>
    %8 = vector.shape_cast %7 : vector<1x8x32xf32> to vector<8x32xf32>
    %9 = arith.addf %5, %8 : vector<8x32xf32>
    %cst_7 = arith.constant 0.000000e+00 : f32
    %10 = vector.broadcast %cst_7 : f32 to vector<8x32xf32>
    %11 = arith.maximumf %9, %10 : vector<8x32xf32>
    %12 = arith.index_cast %c0_i32_4 : i32 to index
    %c0_8 = arith.constant 0 : index
    %c0_9 = arith.constant 0 : index
    %13 = vector.load %arg3[%12, %c0_8, %c0_9] : memref<8x8x32xf32, #tpu.memory_space<vmem>>, vector<1x8x32xf32>
    %14 = vector.shape_cast %13 : vector<1x8x32xf32> to vector<8x32xf32>
    %15 = vector.shape_cast %11 : vector<8x32xf32> to vector<1x8x32xf32>
    tpu.vector_store %arg3[%12, %c0_8, %c0_9], %15 {strides = array<i32>} : memref<8x8x32xf32, #tpu.memory_space<vmem>>, vector<1x8x32xf32>,
    %c1_i32 = arith.constant 1 : i32
    %cst_10 = arith.constant dense<0.000000e+00> : vector<8x32xf32>
    %16 = tpu.matmul %11, %3, %cst_10 {dimension_numbers = #tpu.dot_dimension_numbers<[1], [0], [0], [1], [0, 0, 1, 1], [], []>} : vector<8x32xf32>, vector<32x32xf32>, vector<8x32xf32> -> vector<8x32xf32>
    %17 = arith.index_cast %c1_i32 : i32 to index
    %c0_11 = arith.constant 0 : index
    %c0_12 = arith.constant 0 : index
    %18 = vector.load %arg1[%17, %c0_11, %c0_12] : memref<8x8x32xf32, #tpu.memory_space<vmem>>, vector<1x8x32xf32>
    %19 = vector.shape_cast %18 : vector<1x8x32xf32> to vector<8x32xf32>
    %20 = arith.addf %16, %19 : vector<8x32xf32>
    %cst_13 = arith.constant 0.000000e+00 : f32
    %21 = vector.broadcast %cst_13 : f32 to vector<8x32xf32>
    %22 = arith.maximumf %20, %21 : vector<8x32xf32>
    %23 = arith.index_cast %c1_i32 : i32 to index
    %c0_14 = arith.constant 0 : index
    %c0_15 = arith.constant 0 : index
    %24 = vector.load %arg3[%23, %c0_14, %c0_15] : memref<8x8x32xf32, #tpu.memory_space<vmem>>, vector<1x8x32xf32>
    %25 = vector.shape_cast %24 : vector<1x8x32xf32> to vector<8x32xf32>
    %26 = vector.shape_cast %22 : vector<8x32xf32> to vector<1x8x32xf32>
    tpu.vector_store %arg3[%23, %c0_14, %c0_15], %26 {strides = array<i32>} : memref<8x8x32xf32, #tpu.memory_space<vmem>>, vector<1x8x32xf32>,
    %c2_i32 = arith.constant 2 : i32
    %cst_16 = arith.constant dense<0.000000e+00> : vector<8x32xf32>
    %27 = tpu.matmul %22, %3, %cst_16 {dimension_numbers = #tpu.dot_dimension_numbers<[1], [0], [0], [1], [0, 0, 1, 1], [], []>} : vector<8x32xf32>, vector<32x32xf32>, vector<8x32xf32> -> vector<8x32xf32>
    %28 = arith.index_cast %c2_i32 : i32 to index
    %c0_17 = arith.constant 0 : index
    %c0_18 = arith.constant 0 : index
    %29 = vector.load %arg1[%28, %c0_17, %c0_18] : memref<8x8x32xf32, #tpu.memory_space<vmem>>, vector<1x8x32xf32>
    %30 = vector.shape_cast %29 : vector<1x8x32xf32> to vector<8x32xf32>
    %31 = arith.addf %27, %30 : vector<8x32xf32>
    %cst_19 = arith.constant 0.000000e+00 : f32
    %32 = vector.broadcast %cst_19 : f32 to vector<8x32xf32>
    %33 = arith.maximumf %31, %32 : vector<8x32xf32>
    %34 = arith.index_cast %c2_i32 : i32 to index
    %c0_20 = arith.constant 0 : index
    %c0_21 = arith.constant 0 : index
    %35 = vector.load %arg3[%34, %c0_20, %c0_21] : memref<8x8x32xf32, #tpu.memory_space<vmem>>, vector<1x8x32xf32>
    %36 = vector.shape_cast %35 : vector<1x8x32xf32> to vector<8x32xf32>
    %37 = vector.shape_cast %33 : vector<8x32xf32> to vector<1x8x32xf32>
    tpu.vector_store %arg3[%34, %c0_20, %c0_21], %37 {strides = array<i32>} : memref<8x8x32xf32, #tpu.memory_space<vmem>>, vector<1x8x32xf32>,
    %c3_i32 = arith.constant 3 : i32
    %cst_22 = arith.constant dense<0.000000e+00> : vector<8x32xf32>
    %38 = tpu.matmul %33, %3, %cst_22 {dimension_numbers = #tpu.dot_dimension_numbers<[1], [0], [0], [1], [0, 0, 1, 1], [], []>} : vector<8x32xf32>, vector<32x32xf32>, vector<8x32xf32> -> vector<8x32xf32>
    %39 = arith.index_cast %c3_i32 : i32 to index
    %c0_23 = arith.constant 0 : index
    %c0_24 = arith.constant 0 : index
    %40 = vector.load %arg1[%39, %c0_23, %c0_24] : memref<8x8x32xf32, #tpu.memory_space<vmem>>, vector<1x8x32xf32>
    %41 = vector.shape_cast %40 : vector<1x8x32xf32> to vector<8x32xf32>
    %42 = arith.addf %38, %41 : vector<8x32xf32>
    %cst_25 = arith.constant 0.000000e+00 : f32
    %43 = vector.broadcast %cst_25 : f32 to vector<8x32xf32>
    %44 = arith.maximumf %42, %43 : vector<8x32xf32>
    %45 = arith.index_cast %c3_i32 : i32 to index
    %c0_26 = arith.constant 0 : index
    %c0_27 = arith.constant 0 : index
    %46 = vector.load %arg3[%45, %c0_26, %c0_27] : memref<8x8x32xf32, #tpu.memory_space<vmem>>, vector<1x8x32xf32>
    %47 = vector.shape_cast %46 : vector<1x8x32xf32> to vector<8x32xf32>
    %48 = vector.shape_cast %44 : vector<8x32xf32> to vector<1x8x32xf32>
    tpu.vector_store %arg3[%45, %c0_26, %c0_27], %48 {strides = array<i32>} : memref<8x8x32xf32, #tpu.memory_space<vmem>>, vector<1x8x32xf32>,
    %c4_i32 = arith.constant 4 : i32
    %cst_28 = arith.constant dense<0.000000e+00> : vector<8x32xf32>
    %49 = tpu.matmul %44, %3, %cst_28 {dimension_numbers = #tpu.dot_dimension_numbers<[1], [0], [0], [1], [0, 0, 1, 1], [], []>} : vector<8x32xf32>, vector<32x32xf32>, vector<8x32xf32> -> vector<8x32xf32>
    %50 = arith.index_cast %c4_i32 : i32 to index
    %c0_29 = arith.constant 0 : index
    %c0_30 = arith.constant 0 : index
    %51 = vector.load %arg1[%50, %c0_29, %c0_30] : memref<8x8x32xf32, #tpu.memory_space<vmem>>, vector<1x8x32xf32>
    %52 = vector.shape_cast %51 : vector<1x8x32xf32> to vector<8x32xf32>
    %53 = arith.addf %49, %52 : vector<8x32xf32>
    %cst_31 = arith.constant 0.000000e+00 : f32
    %54 = vector.broadcast %cst_31 : f32 to vector<8x32xf32>
    %55 = arith.maximumf %53, %54 : vector<8x32xf32>
    %56 = arith.index_cast %c4_i32 : i32 to index
    %c0_32 = arith.constant 0 : index
    %c0_33 = arith.constant 0 : index
    %57 = vector.load %arg3[%56, %c0_32, %c0_33] : memref<8x8x32xf32, #tpu.memory_space<vmem>>, vector<1x8x32xf32>
    %58 = vector.shape_cast %57 : vector<1x8x32xf32> to vector<8x32xf32>
    %59 = vector.shape_cast %55 : vector<8x32xf32> to vector<1x8x32xf32>
    tpu.vector_store %arg3[%56, %c0_32, %c0_33], %59 {strides = array<i32>} : memref<8x8x32xf32, #tpu.memory_space<vmem>>, vector<1x8x32xf32>,
    %c5_i32 = arith.constant 5 : i32
    %cst_34 = arith.constant dense<0.000000e+00> : vector<8x32xf32>
    %60 = tpu.matmul %55, %3, %cst_34 {dimension_numbers = #tpu.dot_dimension_numbers<[1], [0], [0], [1], [0, 0, 1, 1], [], []>} : vector<8x32xf32>, vector<32x32xf32>, vector<8x32xf32> -> vector<8x32xf32>
    %61 = arith.index_cast %c5_i32 : i32 to index
    %c0_35 = arith.constant 0 : index
    %c0_36 = arith.constant 0 : index
    %62 = vector.load %arg1[%61, %c0_35, %c0_36] : memref<8x8x32xf32, #tpu.memory_space<vmem>>, vector<1x8x32xf32>
    %63 = vector.shape_cast %62 : vector<1x8x32xf32> to vector<8x32xf32>
    %64 = arith.addf %60, %63 : vector<8x32xf32>
    %cst_37 = arith.constant 0.000000e+00 : f32
    %65 = vector.broadcast %cst_37 : f32 to vector<8x32xf32>
    %66 = arith.maximumf %64, %65 : vector<8x32xf32>
    %67 = arith.index_cast %c5_i32 : i32 to index
    %c0_38 = arith.constant 0 : index
    %c0_39 = arith.constant 0 : index
    %68 = vector.load %arg3[%67, %c0_38, %c0_39] : memref<8x8x32xf32, #tpu.memory_space<vmem>>, vector<1x8x32xf32>
    %69 = vector.shape_cast %68 : vector<1x8x32xf32> to vector<8x32xf32>
    %70 = vector.shape_cast %66 : vector<8x32xf32> to vector<1x8x32xf32>
    tpu.vector_store %arg3[%67, %c0_38, %c0_39], %70 {strides = array<i32>} : memref<8x8x32xf32, #tpu.memory_space<vmem>>, vector<1x8x32xf32>,
    %c6_i32 = arith.constant 6 : i32
    %cst_40 = arith.constant dense<0.000000e+00> : vector<8x32xf32>
    %71 = tpu.matmul %66, %3, %cst_40 {dimension_numbers = #tpu.dot_dimension_numbers<[1], [0], [0], [1], [0, 0, 1, 1], [], []>} : vector<8x32xf32>, vector<32x32xf32>, vector<8x32xf32> -> vector<8x32xf32>
    %72 = arith.index_cast %c6_i32 : i32 to index
    %c0_41 = arith.constant 0 : index
    %c0_42 = arith.constant 0 : index
    %73 = vector.load %arg1[%72, %c0_41, %c0_42] : memref<8x8x32xf32, #tpu.memory_space<vmem>>, vector<1x8x32xf32>
    %74 = vector.shape_cast %73 : vector<1x8x32xf32> to vector<8x32xf32>
    %75 = arith.addf %71, %74 : vector<8x32xf32>
    %cst_43 = arith.constant 0.000000e+00 : f32
    %76 = vector.broadcast %cst_43 : f32 to vector<8x32xf32>
    %77 = arith.maximumf %75, %76 : vector<8x32xf32>
    %78 = arith.index_cast %c6_i32 : i32 to index
    %c0_44 = arith.constant 0 : index
    %c0_45 = arith.constant 0 : index
    %79 = vector.load %arg3[%78, %c0_44, %c0_45] : memref<8x8x32xf32, #tpu.memory_space<vmem>>, vector<1x8x32xf32>
    %80 = vector.shape_cast %79 : vector<1x8x32xf32> to vector<8x32xf32>
    %81 = vector.shape_cast %77 : vector<8x32xf32> to vector<1x8x32xf32>
    tpu.vector_store %arg3[%78, %c0_44, %c0_45], %81 {strides = array<i32>} : memref<8x8x32xf32, #tpu.memory_space<vmem>>, vector<1x8x32xf32>,
    %c7_i32 = arith.constant 7 : i32
    %cst_46 = arith.constant dense<0.000000e+00> : vector<8x32xf32>
    %82 = tpu.matmul %77, %3, %cst_46 {dimension_numbers = #tpu.dot_dimension_numbers<[1], [0], [0], [1], [0, 0, 1, 1], [], []>} : vector<8x32xf32>, vector<32x32xf32>, vector<8x32xf32> -> vector<8x32xf32>
    %83 = arith.index_cast %c7_i32 : i32 to index
    %c0_47 = arith.constant 0 : index
    %c0_48 = arith.constant 0 : index
    %84 = vector.load %arg1[%83, %c0_47, %c0_48] : memref<8x8x32xf32, #tpu.memory_space<vmem>>, vector<1x8x32xf32>
    %85 = vector.shape_cast %84 : vector<1x8x32xf32> to vector<8x32xf32>
    %86 = arith.addf %82, %85 : vector<8x32xf32>
    %cst_49 = arith.constant 0.000000e+00 : f32
    %87 = vector.broadcast %cst_49 : f32 to vector<8x32xf32>
    %88 = arith.maximumf %86, %87 : vector<8x32xf32>
    %89 = arith.index_cast %c7_i32 : i32 to index
    %c0_50 = arith.constant 0 : index
    %c0_51 = arith.constant 0 : index
    %90 = vector.load %arg3[%89, %c0_50, %c0_51] : memref<8x8x32xf32, #tpu.memory_space<vmem>>, vector<1x8x32xf32>
    %91 = vector.shape_cast %90 : vector<1x8x32xf32> to vector<8x32xf32>
    %92 = vector.shape_cast %88 : vector<8x32xf32> to vector<1x8x32xf32>
    tpu.vector_store %arg3[%89, %c0_50, %c0_51], %92 {strides = array<i32>} : memref<8x8x32xf32, #tpu.memory_space<vmem>>, vector<1x8x32xf32>,
    %c8_i32 = arith.constant 8 : i32
    %c0_52 = arith.constant 0 : index
    %c0_53 = arith.constant 0 : index
    %93 = vector.load %arg4[%c0_52, %c0_53] : memref<8x32xf32, #tpu.memory_space<vmem>>, vector<8x32xf32>
    tpu.vector_store %arg4[%c0_52, %c0_53], %88 {strides = array<i32>} : memref<8x32xf32, #tpu.memory_space<vmem>>, vector<8x32xf32>,
    return
  }
  func.func @transform_0(%arg0: i32) -> (i32, i32, i32) {
    %c0_i32 = arith.constant 0 : i32
    %c0_i32_0 = arith.constant 0 : i32
    %c0_i32_1 = arith.constant 0 : i32
    return %arg0, %c0_i32, %c0_i32_0 : i32, i32, i32
  }
  func.func @transform_1(%arg0: i32) -> (i32, i32) {
    %c0_i32 = arith.constant 0 : i32
    %c0_i32_0 = arith.constant 0 : i32
    %c0_i32_1 = arith.constant 0 : i32
    return %c0_i32, %c0_i32_0 : i32, i32
  }
  func.func @transform_2(%arg0: i32) -> (i32, i32, i32) {
    %c0_i32 = arith.constant 0 : i32
    %c0_i32_0 = arith.constant 0 : i32
    %c0_i32_1 = arith.constant 0 : i32
    return %arg0, %c0_i32, %c0_i32_0 : i32, i32, i32
  }
}

</mosaic_0001>

<bundles_post_ra>
// kernel: tpu_custom_call.1
= control target key start
LH: loop header
LB: loop body
LE: loop exit
PB: predicated region body
PF: predicated region fallthrough
CT: control target
= control target key end

     0   :  { %7 = vsyncpa [#allocation4], 0  ;;  %s1049_s0 = inlined_call_operand.hbm [shape: f32[8,8,32], index: 0, kind: input, shape index: {}]   ;;  %s1050_s1 = inlined_call_operand.hbm [shape: f32[32,32], index: 1, kind: input, shape index: {}]   ;;  %s1051_s2 = inlined_call_operand.hbm [shape: f32[8,8,32], index: 2, kind: output, shape index: {}]  }
   0x1   :  { %8 = vsyncpa [#allocation7], 0 }
   0x2   :  { %9 = vsyncpa [#allocation5], 0  ;;  %s902_s9 = smov [#allocation3]  }
   0x3   :  { %s15_s10 = sshll.u32 %s902_s9, 4  ;;  %s16_s10 = int_to_ptr.vmem [resolvable:$true] %s15_s10 }
   0x4   :  { %s844_s11 = scalar_lea.vmem %s16_s10, 1024  ;;  %p849_p1 = scmp.lt.s32.totalorder %s16_s10, %s16_s10 }
   0x5   :  { %p845_p0 = scmp.ne.s32.totalorder %s16_s10, %s844_s11  ;;  %p850_p2 = scmp.lt.s32.totalorder %s844_s11, %s844_s11 }
   0x7   :  { %p851_p3 = por %p850_p2, %p849_p1 }
   0x9   :  { %p852_p4 = pnand %p851_p3, %p845_p0 }
   0xb   :  { %855 = shalt.err (!%p852_p4)
}
   0xc   :  { %s903_s12 = smov 128   ;;  %s904_s13 = smov 8  }
   0xd   :  { %21 = dma.hbm_to_vmem [thread:$0]  %s1049_s0, 1024, %s16_s10, [#allocation4], %s903_s12, %s903_s12, %s904_s13  }
   0xe   :  { %s905_s16 = smov [#allocation6]  }
   0xf   :  { %s27_s17 = sshll.u32 %s905_s16, 4  ;;  %s28_s17 = int_to_ptr.vmem [resolvable:$true] %s27_s17 }
  0x10   :  { %s864_s18 = scalar_lea.vmem %s28_s17, 512  ;;  %p869_p6 = scmp.lt.s32.totalorder %s28_s17, %s28_s17 }
  0x11   :  { %p865_p5 = scmp.ne.s32.totalorder %s28_s17, %s864_s18  ;;  %p870_p7 = scmp.lt.s32.totalorder %s864_s18, %s864_s18 }
  0x13   :  { %p871_p8 = por %p870_p7, %p869_p6 }
  0x15   :  { %p872_p9 = pnand %p871_p8, %p865_p5 }
  0x17   :  { %875 = shalt.err (!%p872_p9)
}
  0x18   :  { %33 = dma.hbm_to_vmem [thread:$0]  %s1050_s1, 512, %s28_s17, [#allocation7], %s903_s12, %s903_s12, %s904_s13  }
  0x19   :  { %896 = dma.done.wait [#allocation4], 1024  }
  0x1a   :  { %897 = vsyncadd [#allocation4], 4294966272 }
  0x1b   :  { %898 = dma.done.wait [#allocation7], 512  }
  0x1c   :  { %899 = vsyncadd [#allocation7], 4294966784  ;;  %vm44_vm0 = vcmask 261120   ;;  %v906_v0 = vmov 0.0   ;;  %vm907_vm1 = vmmov 0   ;;  %v944_v1 = vld [vmem:[#allocation6 + $0x18] sm:$0xff] }
  0x1d   :  { %741 = vmatprep.subr.mxu0 %v906_v0  ;;  %749 = vmatprep.mubr.msk.f32.mxu0 %vm907_vm1, %v906_v0  ;;  %45 = vst.msk [vmem:[#allocation2] sm:$0xff] %vm44_vm0, %v906_v0  ;;  %v946_v2 = vld [vmem:[#allocation6 + $0x10] sm:$0xff]  ;;  %v951_v3 = vld [vmem:[#allocation6 + $0x8] sm:$0xff]  ;;  %v957_v4 = vld [vmem:[#allocation6] sm:$0xff]  ;;  %s908_s0 = smov [#allocation8]  }
  0x1e   :  { %752 = vmatprep.subr.mxu1 %v906_v0  ;;  %760 = vmatprep.mubr.msk.f32.mxu1 %vm907_vm1, %v906_v0  ;;  %v51_v6 = vld [vmem:[#allocation3] sm:$0xff]  ;;  %v129_v11 = vld [vmem:[#allocation3 + $0x8] sm:$0xff]  ;;  %v207_v16 = vld [vmem:[#allocation3 + $0x10] sm:$0xff]  ;;  %s680_s1 = sshll.u32 %s908_s0, 4  ;;  %s681_s1 = int_to_ptr.vmem [resolvable:$true] %s680_s1 }
  0x1f   :  { %742 = vmatpush3.msra.mxu0 %v944_v1  ;;  %753 = vmatpush3.msra.mxu1 %v944_v1  ;;  %v285_v21 = vld [vmem:[#allocation3 + $0x18] sm:$0xff]  ;;  %v363_v26 = vld [vmem:[#allocation3 + $0x20] sm:$0xff]  ;;  %v441_v31 = vld [vmem:[#allocation3 + $0x28] sm:$0xff]  ;;  %s876_s21 = scalar_lea.vmem %s681_s1, 1024  ;;  %p881_p11 = scmp.lt.s32.totalorder %s681_s1, %s681_s1 }
  0x20   :  { %743 = vmatprep.subr.mxu0 %v906_v0  ;;  %754 = vmatprep.subr.mxu1 %v906_v0  ;;  %v519_v36 = vld [vmem:[#allocation3 + $0x30] sm:$0xff]  ;;  %v597_v41 = vld [vmem:[#allocation3 + $0x38] sm:$0xff]  ;;  %p877_p10 = scmp.ne.s32.totalorder %s681_s1, %s876_s21  ;;  %p882_p12 = scmp.lt.s32.totalorder %s876_s21, %s876_s21 }
  0x21   :  { %744 = vmatpush3.msra.mxu0 %v946_v2  ;;  %755 = vmatpush3.msra.mxu1 %v946_v2 }
  0x22   :  { %745 = vmatprep.subr.mxu0 %v906_v0  ;;  %756 = vmatprep.subr.mxu1 %v906_v0  ;;  %p883_p13 = por %p882_p12, %p881_p11 }
  0x23   :  { %746 = vmatpush3.msra.mxu0 %v951_v3  ;;  %757 = vmatpush3.msra.mxu1 %v951_v3 }
  0x24   :  { %v50_v5 = vld [vmem:[#allocation2] sm:$0xff]  ;;  %747 = vmatprep.subr.mxu0 %v906_v0  ;;  %758 = vmatprep.subr.mxu1 %v906_v0  ;;  %p884_p0 = pnand %p883_p13, %p877_p10 }
  0x25   :  { %748 = vmatpush3.msra.mxu0 %v957_v4  ;;  %759 = vmatpush3.msra.mxu1 %v957_v4 }
  0x26   :  { %750 = vmatmul.mubr.msk.f32.vlgmr.msra.gmra.mxu0 %vm44_vm0, %v50_v5  ;;  %763 = vmatprep.subr.mxu0 %v906_v0 }
  0x27   :  { %764 = vmatpush3.msra.mxu0 %v944_v1  ;;  %771 = vmatprep.mubr.msk.f32.mxu0 %vm907_vm1, %v906_v0 }
  0x28   :  { %765 = vmatprep.subr.mxu0 %v906_v0  ;;  %774 = vmatprep.subr.mxu1 %v906_v0 }
  0x29   :  { %766 = vmatpush3.msra.mxu0 %v946_v2 }
  0x2a   :  { %767 = vmatprep.subr.mxu0 %v906_v0 }
  0x2b   :  { %768 = vmatpush3.msra.mxu0 %v951_v3 }
  0x2c   :  { %769 = vmatprep.subr.mxu0 %v906_v0 }
  0x2d   :  { %770 = vmatpush3.msra.mxu0 %v957_v4 }
  0x2e   :  { %785 = vmatprep.subr.mxu0 %v906_v0 }
  0xe6   :  { %v122_v7 = vpop.f32.mrf.mxu0 }
  0xe7   :  { %v123_v8 = vadd.f32 %v122_v7, %v51_v6 }
  0xe8   :  { %v751_v9 = vpop.f32.mrf.mxu0 }
  0xe9   :  { %v126_v10 = vmax.f32 %v123_v8, 0.0 }
  0xeb   :  { %127 = vst.msk [vmem:[#allocation8] sm:$0xff] %vm44_vm0, %v126_v10  ;;  %761 = vmatmul.mubr.msk.f32.vlgmr.msra.gmra.mxu1 %vm44_vm0, %v126_v10 }
  0xec   :  { %775 = vmatpush3.msra.mxu1 %v944_v1  ;;  %782 = vmatprep.mubr.msk.f32.mxu1 %vm907_vm1, %v906_v0 }
  0xed   :  { %776 = vmatprep.subr.mxu1 %v906_v0 }
  0xee   :  { %777 = vmatpush3.msra.mxu1 %v946_v2 }
  0xef   :  { %778 = vmatprep.subr.mxu1 %v906_v0 }
  0xf0   :  { %779 = vmatpush3.msra.mxu1 %v951_v3 }
  0xf1   :  { %780 = vmatprep.subr.mxu1 %v906_v0 }
  0xf2   :  { %781 = vmatpush3.msra.mxu1 %v957_v4 }
  0xf3   :  { %796 = vmatprep.subr.mxu1 %v906_v0 }
 0x1ab   :  { %v199_v12 = vpop.f32.mrf.mxu1 }
 0x1ac   :  { %v200_v13 = vadd.f32 %v199_v12, %v129_v11 }
 0x1ad   :  { %v762_v14 = vpop.f32.mrf.mxu1 }
 0x1ae   :  { %v203_v15 = vmax.f32 %v200_v13, 0.0 }
 0x1b0   :  { %205 = vst.msk [vmem:[#allocation8 + $0x8] sm:$0xff] %vm44_vm0, %v203_v15  ;;  %772 = vmatmul.mubr.msk.f32.vlgmr.msra.gmra.mxu0 %vm44_vm0, %v203_v15 }
 0x1b1   :  { %786 = vmatpush3.msra.mxu0 %v944_v1  ;;  %793 = vmatprep.mubr.msk.f32.mxu0 %vm907_vm1, %v906_v0 }
 0x1b2   :  { %787 = vmatprep.subr.mxu0 %v906_v0 }
 0x1b3   :  { %788 = vmatpush3.msra.mxu0 %v946_v2 }
 0x1b4   :  { %789 = vmatprep.subr.mxu0 %v906_v0 }
 0x1b5   :  { %790 = vmatpush3.msra.mxu0 %v951_v3 }
 0x1b6   :  { %791 = vmatprep.subr.mxu0 %v906_v0 }
 0x1b7   :  { %792 = vmatpush3.msra.mxu0 %v957_v4 }
 0x1b8   :  { %807 = vmatprep.subr.mxu0 %v906_v0 }
 0x270   :  { %v277_v17 = vpop.f32.mrf.mxu0 }
 0x271   :  { %v278_v18 = vadd.f32 %v277_v17, %v207_v16 }
 0x272   :  { %v773_v19 = vpop.f32.mrf.mxu0 }
 0x273   :  { %v281_v20 = vmax.f32 %v278_v18, 0.0 }
 0x275   :  { %283 = vst.msk [vmem:[#allocation8 + $0x10] sm:$0xff] %vm44_vm0, %v281_v20  ;;  %783 = vmatmul.mubr.msk.f32.vlgmr.msra.gmra.mxu1 %vm44_vm0, %v281_v20 }
 0x276   :  { %797 = vmatpush3.msra.mxu1 %v944_v1  ;;  %804 = vmatprep.mubr.msk.f32.mxu1 %vm907_vm1, %v906_v0 }
 0x277   :  { %798 = vmatprep.subr.mxu1 %v906_v0 }
 0x278   :  { %799 = vmatpush3.msra.mxu1 %v946_v2 }
 0x279   :  { %800 = vmatprep.subr.mxu1 %v906_v0 }
 0x27a   :  { %801 = vmatpush3.msra.mxu1 %v951_v3 }
 0x27b   :  { %802 = vmatprep.subr.mxu1 %v906_v0 }
 0x27c   :  { %803 = vmatpush3.msra.mxu1 %v957_v4 }
 0x27d   :  { %818 = vmatprep.subr.mxu1 %v906_v0 }
 0x335   :  { %v355_v22 = vpop.f32.mrf.mxu1 }
 0x336   :  { %v356_v23 = vadd.f32 %v355_v22, %v285_v21 }
 0x337   :  { %v784_v24 = vpop.f32.mrf.mxu1 }
 0x338   :  { %v359_v25 = vmax.f32 %v356_v23, 0.0 }
 0x33a   :  { %361 = vst.msk [vmem:[#allocation8 + $0x18] sm:$0xff] %vm44_vm0, %v359_v25  ;;  %794 = vmatmul.mubr.msk.f32.vlgmr.msra.gmra.mxu0 %vm44_vm0, %v359_v25 }
 0x33b   :  { %808 = vmatpush3.msra.mxu0 %v944_v1  ;;  %815 = vmatprep.mubr.msk.f32.mxu0 %vm907_vm1, %v906_v0 }
 0x33c   :  { %809 = vmatprep.subr.mxu0 %v906_v0 }
 0x33d   :  { %810 = vmatpush3.msra.mxu0 %v946_v2 }
 0x33e   :  { %811 = vmatprep.subr.mxu0 %v906_v0 }
 0x33f   :  { %812 = vmatpush3.msra.mxu0 %v951_v3 }
 0x340   :  { %813 = vmatprep.subr.mxu0 %v906_v0 }
 0x341   :  { %814 = vmatpush3.msra.mxu0 %v957_v4 }
 0x3fa   :  { %v433_v27 = vpop.f32.mrf.mxu0 }
 0x3fb   :  { %v434_v28 = vadd.f32 %v433_v27, %v363_v26 }
 0x3fc   :  { %v795_v29 = vpop.f32.mrf.mxu0 }
 0x3fd   :  { %v437_v30 = vmax.f32 %v434_v28, 0.0 }
 0x3ff   :  { %439 = vst.msk [vmem:[#allocation8 + $0x20] sm:$0xff] %vm44_vm0, %v437_v30  ;;  %805 = vmatmul.mubr.msk.f32.vlgmr.msra.gmra.mxu1 %vm44_vm0, %v437_v30 }
 0x400   :  { %819 = vmatpush3.msra.mxu1 %v944_v1  ;;  %826 = vmatprep.mubr.msk.f32.mxu1 %vm907_vm1, %v906_v0 }
 0x401   :  { %820 = vmatprep.subr.mxu1 %v906_v0 }
 0x402   :  { %821 = vmatpush3.msra.mxu1 %v946_v2 }
 0x403   :  { %822 = vmatprep.subr.mxu1 %v906_v0 }
 0x404   :  { %823 = vmatpush3.msra.mxu1 %v951_v3 }
 0x405   :  { %824 = vmatprep.subr.mxu1 %v906_v0 }
 0x406   :  { %825 = vmatpush3.msra.mxu1 %v957_v4 }
 0x4bf   :  { %v511_v32 = vpop.f32.mrf.mxu1 }
 0x4c0   :  { %v512_v33 = vadd.f32 %v511_v32, %v441_v31 }
 0x4c1   :  { %v806_v34 = vpop.f32.mrf.mxu1 }
 0x4c2   :  { %v515_v35 = vmax.f32 %v512_v33, 0.0 }
 0x4c4   :  { %517 = vst.msk [vmem:[#allocation8 + $0x28] sm:$0xff] %vm44_vm0, %v515_v35  ;;  %816 = vmatmul.mubr.msk.f32.vlgmr.msra.gmra.mxu0 %vm44_vm0, %v515_v35 }
 0x584   :  { %v589_v37 = vpop.f32.mrf.mxu0 }
 0x585   :  { %v590_v38 = vadd.f32 %v589_v37, %v519_v36 }
 0x586   :  { %v817_v39 = vpop.f32.mrf.mxu0 }
 0x587   :  { %v593_v40 = vmax.f32 %v590_v38, 0.0 }
 0x589   :  { %595 = vst.msk [vmem:[#allocation8 + $0x30] sm:$0xff] %vm44_vm0, %v593_v40  ;;  %827 = vmatmul.mubr.msk.f32.vlgmr.msra.gmra.mxu1 %vm44_vm0, %v593_v40 }
 0x649   :  { %v667_v42 = vpop.f32.mrf.mxu1 }
 0x64a   :  { %v668_v43 = vadd.f32 %v667_v42, %v597_v41 }
 0x64b   :  { %v828_v44 = vpop.f32.mrf.mxu1 }
 0x64c   :  { %v671_v45 = vmax.f32 %v668_v43, 0.0 }
 0x64e   :  { %673 = vst.msk [vmem:[#allocation8 + $0x38] sm:$0xff] %vm44_vm0, %v671_v45  ;;  %674 = vst.msk [vmem:[#allocation2] sm:$0xff] %vm44_vm0, %v671_v45 }
 0x64f   :  { %887 = shalt.err (!%p884_p0)
}
 0x650   :  { %686 = dma.vmem_to_hbm [thread:$0]  %s681_s1, 1024, %s1051_s2, [#allocation5], %s903_s12, %s903_s12, %s904_s13  }
 0x651   :  { %900 = dma.done.wait [#allocation5], 1024  }
 0x652   :  { %901 = vsyncadd [#allocation5], 4294966272 }
 0x653   :  { %690 = vsyncpa [#allocation4], 1 }
 0x654   :  { %691 = vsyncpa [#allocation7], 1 }
 0x655   :  { %692 = vsyncpa [#allocation5], 1 }

</bundles_post_ra>
